<compile_context>
chip_gen: v7x
topology: tpu7x:2x2x1
jax: 0.10.0
libtpu: 0.0.40
codegen_flags: <defaults>
</compile_context>

<pallas_src>
import functools

import jax
import jax.numpy as jnp
from jax.experimental import pallas as pl
from jax.experimental.pallas import tpu as pltpu


# ------------------------------- helpers -------------------------------------

def _round_up(x, m):
    return (x + m - 1) // m * m


def _pad2d(a, rows, cols):
    r, c = a.shape
    if r == rows and c == cols:
        return a
    return jnp.pad(a, ((0, rows - r), (0, cols - c)))


# ----------------------------- Pallas kernel ---------------------------------

def _matmul_epilogue_kernel(*refs, apply_relu, residual_mode):
    """k==0: acc = bias;  acc += x@w;  last k: [+res | +xs@wsc] [relu] store."""
    if residual_mode == "none":
        x_ref, w_ref, b_ref, o_ref, acc_ref = refs
        res_ref = xs_ref = wsc_ref = None
    elif residual_mode == "add":
        x_ref, w_ref, b_ref, res_ref, o_ref, acc_ref = refs
        xs_ref = wsc_ref = None
    else:  # "proj": fused 1x1-conv (+BN) shortcut
        x_ref, w_ref, b_ref, xs_ref, wsc_ref, o_ref, acc_ref = refs
        res_ref = None

    k = pl.program_id(2)

    @pl.when(k == 0)
    def _init():
        # Bias folded into accumulator init (removes the epilogue add).
        acc_ref[...] = jnp.broadcast_to(b_ref[...], acc_ref.shape)

    acc_ref[...] += jnp.dot(x_ref[...], w_ref[...],
                            preferred_element_type=jnp.float32)

    @pl.when(k == pl.num_programs(2) - 1)
    def _finalize():
        out = acc_ref[...]
        if residual_mode == "add":
            out = out + res_ref[...].astype(jnp.float32)
        elif residual_mode == "proj":
            out = out + jnp.dot(xs_ref[...], wsc_ref[...],
                                preferred_element_type=jnp.float32)
        if apply_relu:
            out = jnp.maximum(out, 0.0)
        o_ref[...] = out.astype(o_ref.dtype)


def fused_conv_bn(patches, w_mat, scale, bias, *, residual=None,
                  proj_patches=None, proj_w=None, relu=True,
                  out_dtype=jnp.float32):
    """Tiled fused (im2col-matmul + folded-BN [+ residual | + fused 1x1 shortcut]
    [+ relu]) as a single Pallas call. Operands in bf16, accumulation in f32."""
    M, K = patches.shape
    Kw, cout = w_mat.shape
    assert K == Kw

    # Fold BN scale into the weights in f32, then cast ONCE to bf16.
    w_folded = (w_mat.astype(jnp.float32)
                * scale.astype(jnp.float32)[None, :]).astype(jnp.bfloat16)
    bias = bias.astype(jnp.float32)

    # ---- tile sizes / lane-dense padding ((8,128)-aligned) ----
    n_pad = _round_up(cout, 128)
    if n_pad >= 512 and n_pad % 512 == 0:
        tn = 512
    elif n_pad % 256 == 0:
        tn = 256
    else:
        tn = 128
    grid_j = n_pad // tn

    # tk: largest multiple of 128 dividing k_pad, capped at 2048 (feeds the
    # 256-wide MXU properly instead of falling back to 128).
    k_pad = _round_up(K, 128)
    tk = 128
    d = 128
    while d <= min(k_pad, 2048):
        if k_pad % d == 0:
            tk = d
        d += 128

    m8 = _round_up(M, 8)
    tm = 512 if m8 > 512 else m8
    m_pad = _round_up(M, tm)
    # v7x megacore: guarantee >= 2 tiles on the parallel axes when possible.
    if grid_j * (m_pad // tm) == 1 and tm >= 16:
        tm = _round_up((tm + 1) // 2, 8)
        m_pad = _round_up(M, tm)
    grid_i = m_pad // tm

    x_p = _pad2d(patches.astype(jnp.bfloat16), m_pad, k_pad)
    w_p = _pad2d(w_folded, k_pad, n_pad)
    b_p = _pad2d(bias.reshape(1, cout), 1, n_pad)

    residual_mode = "none"
    inputs = [x_p, w_p, b_p]
    in_specs = [
        pl.BlockSpec((tm, tk), lambda i, j, k: (i, k)),
        pl.BlockSpec((tk, tn), lambda i, j, k: (k, j)),
        pl.BlockSpec((1, tn), lambda i, j, k: (0, j)),
    ]
    cin_pad = 0
    if residual is not None:
        residual_mode = "add"
        inputs.append(_pad2d(residual.astype(jnp.bfloat16), m_pad, n_pad))
        in_specs.append(pl.BlockSpec((tm, tn), lambda i, j, k: (i, j)))
    elif proj_patches is not None:
        residual_mode = "proj"
        cin = proj_patches.shape[1]
        cin_pad = _round_up(cin, 128)
        inputs.append(_pad2d(proj_patches.astype(jnp.bfloat16), m_pad, cin_pad))
        inputs.append(_pad2d(proj_w.astype(jnp.bfloat16), cin_pad, n_pad))
        in_specs.append(pl.BlockSpec((tm, cin_pad), lambda i, j, k: (i, 0)))
        in_specs.append(pl.BlockSpec((cin_pad, tn), lambda i, j, k: (0, j)))

    grid = (grid_i, grid_j, k_pad // tk)

    kernel = functools.partial(_matmul_epilogue_kernel,
                               apply_relu=relu, residual_mode=residual_mode)

    out_isz = jnp.dtype(out_dtype).itemsize
    # VMEM budget: double-buffered input/output tiles + f32 accumulator.
    vmem_need = (2 * tm * tk * 2 + 2 * tk * tn * 2 + 2 * 8 * tn * 4
                 + 2 * tm * tn * out_isz + tm * tn * 4)
    if residual_mode == "add":
        vmem_need += 2 * tm * tn * 2
    elif residual_mode == "proj":
        vmem_need += 2 * (tm * cin_pad * 2 + cin_pad * tn * 2)
    vmem_limit = int(min(max(vmem_need * 3 // 2, 32 << 20), 48 << 20))

    # Advisory cost: account for re-streaming across the parallel axes.
    flops = 2 * m_pad * k_pad * n_pad
    bytes_accessed = (m_pad * k_pad * 2 * grid_j + k_pad * n_pad * 2 * grid_i
                      + m_pad * n_pad * out_isz)
    if residual_mode == "add":
        bytes_accessed += m_pad * n_pad * 2
    elif residual_mode == "proj":
        flops += 2 * m_pad * cin_pad * n_pad
        bytes_accessed += (m_pad * cin_pad * 2 * grid_j
                           + cin_pad * n_pad * 2 * grid_i)

    out_padded = pl.pallas_call(
        kernel,
        out_shape=jax.ShapeDtypeStruct((m_pad, n_pad), out_dtype),
        grid_spec=pltpu.PrefetchScalarGridSpec(
            num_scalar_prefetch=0,
            grid=grid,
            in_specs=in_specs,
            out_specs=pl.BlockSpec((tm, tn), lambda i, j, k: (i, j)),
            scratch_shapes=[pltpu.VMEM((tm, tn), jnp.float32)],
        ),
        compiler_params=pltpu.CompilerParams(
            dimension_semantics=("parallel", "parallel", "arbitrary"),
            vmem_limit_bytes=vmem_limit),
        cost_estimate=pl.CostEstimate(
            flops=flops, transcendentals=0, bytes_accessed=bytes_accessed),
    )(*inputs)

    if m_pad == M and n_pad == cout:
        return out_padded
    return out_padded[:M, :cout]


# ------------------------------- JAX glue ------------------------------------

def im2col(x_nhwc, ksize, stride, pad):
    """(N,H,W,C) -> (N*Ho*Wo, ksize*ksize*C), K ordered (ky, kx, c)."""
    # TODO(synk): in-kernel implicit im2col (halo-tile DMA, memory_space=pl.ANY)
    # to avoid materializing the 9x-inflated patch tensor in HBM.
    xp = jnp.pad(x_nhwc, ((0, 0), (pad, pad), (pad, pad), (0, 0)))
    n, hp, wp, c = xp.shape
    ho = (hp - ksize) // stride + 1
    wo = (wp - ksize) // stride + 1
    taps = []
    for ky in range(ksize):
        for kx in range(ksize):
            taps.append(
                xp[:, ky:ky + stride * ho:stride, kx:kx + stride * wo:stride, :]
            )
    cols = jnp.stack(taps, axis=3)  # (N, Ho, Wo, k*k, C)
    return cols.reshape(n * ho * wo, ksize * ksize * c), ho, wo


def bn_fold(gamma, beta, mean, var, eps=1e-5):
    scale = gamma / jnp.sqrt(var + eps)
    bias = beta - mean * scale
    return scale, bias


def basic_block_forward_nhwc(x_nhwc, w1, bn1, w2, bn2, w_sc, bn_sc, stride,
                             fake_relu=False, out_dtype=jnp.float32):
    """BasicBlock forward, NHWC in / NHWC out (preferred when stacking)."""
    n, _, _, cin = x_nhwc.shape
    planes = w1.shape[0]

    s1, b1 = bn_fold(*bn1)
    s2, b2 = bn_fold(*bn2)

    xb = x_nhwc.astype(jnp.bfloat16)  # bf16 activations: half the HBM traffic

    # ----- conv1 + bn1 + relu (bf16 intermediate) -----
    p1, ho1, wo1 = im2col(xb, 3, stride, 1)
    w1_mat = jnp.transpose(w1, (2, 3, 1, 0)).reshape(9 * cin, planes)
    out1 = fused_conv_bn(p1, w1_mat, s1, b1, relu=True, out_dtype=jnp.bfloat16)
    out1 = out1.reshape(n, ho1, wo1, planes)

    # ----- conv2 + bn2 + shortcut + relu, fused in ONE pallas_call -----
    p2, ho2, wo2 = im2col(out1, 3, 1, 1)
    w2_mat = jnp.transpose(w2, (2, 3, 1, 0)).reshape(9 * planes, planes)

    has_proj = (stride != 1) or (cin != planes)
    if has_proj:
        ssc, bsc = bn_fold(*bn_sc)
        xs = xb[:, ::stride, ::stride, :].reshape(-1, cin)   # 1x1 stride conv
        w_sc_mat = jnp.transpose(w_sc.reshape(planes, cin), (1, 0))
        w_sc_folded = (w_sc_mat.astype(jnp.float32)
                       * ssc.astype(jnp.float32)[None, :])
        out2 = fused_conv_bn(p2, w2_mat, s2, b2 + bsc,
                             proj_patches=xs, proj_w=w_sc_folded,
                             relu=True, out_dtype=out_dtype)
    else:
        res = xb.reshape(-1, cin)                              # identity shortcut
        out2 = fused_conv_bn(p2, w2_mat, s2, b2, residual=res,
                             relu=True, out_dtype=out_dtype)

    # TODO(synk): FakeReLU only changes the backward pass; forward is ReLU.
    del fake_relu
    return out2.reshape(n, ho2, wo2, planes)


def basic_block_forward(x_nchw, w1, bn1, w2, bn2, w_sc, bn_sc, stride,
                        fake_relu=False):
    """PyTorch-compatible NCHW interface (transposes only at the boundary)."""
    x = jnp.transpose(x_nchw, (0, 2, 3, 1))                    # NHWC
    out = basic_block_forward_nhwc(x, w1, bn1, w2, bn2, w_sc, bn_sc, stride,
                                   fake_relu=fake_relu)
    return jnp.transpose(out, (0, 3, 1, 2))                    # back to NCHW


# --------------------------- plain-JAX reference ------------------------------

def reference_forward(x, w1, bn1, w2, bn2, w_sc, bn_sc, stride):
    def conv(x_, w_, s, p):
        return jax.lax.conv_general_dilated(
            x_, w_, (s, s), ((p, p), (p, p)),
            dimension_numbers=("NCHW", "OIHW", "NCHW"))

    def bn(x_, params):
        g, b, m, v = params
        sc = g / jnp.sqrt(v + 1e-5)
        return x_ * sc.reshape(1, -1, 1, 1) + (b - m * sc).reshape(1, -1, 1, 1)

    out = jax.nn.relu(bn(conv(x, w1, stride, 1), bn1))
    out = bn(conv(out, w2, 1, 1), bn2)
    if stride != 1 or x.shape[1] != w1.shape[0]:
        short = bn(conv(x, w_sc, stride, 0), bn_sc)
    else:
        short = x
    return jax.nn.relu(out + short)


# ---------------------------------- main --------------------------------------

if __name__ == "__main__":
    def bn_params(k, ch):
        k1, k2, k3, k4 = jax.random.split(k, 4)
        gamma = jax.random.uniform(k1, (ch,), minval=0.5, maxval=1.5)
        beta = 0.1 * jax.random.normal(k2, (ch,))
        mean = 0.1 * jax.random.normal(k3, (ch,))
        var = jax.random.uniform(k4, (ch,), minval=0.5, maxval=1.5)
        return gamma, beta, mean, var

    # --- Case A: stride-2 block with projection (1x1 conv + BN) shortcut ---
    key = jax.random.PRNGKey(0)
    N, in_planes, H, W = 2, 4, 16, 16
    planes, stride = 8, 2
    ks = jax.random.split(key, 8)
    x = jax.random.normal(ks[0], (N, in_planes, H, W), jnp.float32)
    w1 = 0.1 * jax.random.normal(ks[1], (planes, in_planes, 3, 3), jnp.float32)
    w2 = 0.1 * jax.random.normal(ks[2], (planes, planes, 3, 3), jnp.float32)
    w_sc = 0.1 * jax.random.normal(ks[3], (planes, in_planes, 1, 1), jnp.float32)
    bn1 = bn_params(ks[4], planes)
    bn2 = bn_params(ks[5], planes)
    bn_sc = bn_params(ks[6], planes)

    out = basic_block_forward(x, w1, bn1, w2, bn2, w_sc, bn_sc, stride)
    out = jax.block_until_ready(out)
    ref = reference_forward(x, w1, bn1, w2, bn2, w_sc, bn_sc, stride)
    assert out.shape == ref.shape, (out.shape, ref.shape)
    # bf16 operands / intermediates -> relaxed tolerance vs f32 reference.
    assert bool(jnp.allclose(out, ref, atol=5e-2, rtol=5e-2)), "proj-block mismatch"

    # --- Case B: stride-1 identity-shortcut block ---
    ks2 = jax.random.split(jax.random.PRNGKey(1), 4)
    planes_b = 8
    xb = jax.random.normal(ks2[0], (N, planes_b, H, W), jnp.float32)
    w1b = 0.1 * jax.random.normal(ks2[1], (planes_b, planes_b, 3, 3), jnp.float32)
    w2b = 0.1 * jax.random.normal(ks2[2], (planes_b, planes_b, 3, 3), jnp.float32)
    bn1b = bn_params(ks2[3], planes_b)
    bn2b = bn_params(jax.random.PRNGKey(2), planes_b)

    out_b = basic_block_forward(xb, w1b, bn1b, w2b, bn2b, None, None, 1)
    out_b = jax.block_until_ready(out_b)
    ref_b = reference_forward(xb, w1b, bn1b, w2b, bn2b, None, None, 1)
    assert out_b.shape == ref_b.shape, (out_b.shape, ref_b.shape)
    assert bool(jnp.allclose(out_b, ref_b, atol=5e-2, rtol=5e-2)), "identity-block mismatch"

    print("KERNEL_OK")
</pallas_src>

<mosaic_0001>
module attributes {stable_mosaic.version = 11 : i64} {
  func.func @_matmul_epilogue_kernel(%arg0: i32, %arg1: i32, %arg2: i32, %arg3: memref<64x128xbf16, #tpu.memory_space<vmem>>, %arg4: memref<128x128xbf16, #tpu.memory_space<vmem>>, %arg5: memref<1x128xf32, #tpu.memory_space<vmem>>, %arg6: memref<64x128xbf16, #tpu.memory_space<vmem>>, %arg7: memref<64x128xf32, #tpu.memory_space<vmem>>) attributes {dimension_semantics = [#tpu.dimension_semantics<parallel>, #tpu.dimension_semantics<parallel>, #tpu.dimension_semantics<arbitrary>], iteration_bounds = array<i64: 2, 1, 1>, scalar_prefetch = 0 : i64, scratch_operands = 1 : i64, tpu.core_type = #tpu.core_type<tc>, window_params = [{transform_indices = @transform_0, window_bounds = array<i64: 64, 128>}, {transform_indices = @transform_1, window_bounds = array<i64: 128, 128>}, {transform_indices = @transform_2, window_bounds = array<i64: 1, 128>}, {transform_indices = @transform_3, window_bounds = array<i64: 64, 128>}]} {
    %c0_i32 = arith.constant 0 : i32
    %0 = arith.cmpi eq, %arg2, %c0_i32 : i32
    %1 = arith.extui %0 : i1 to i32
    %c0_i32_0 = arith.constant 0 : i32
    %2 = arith.cmpi ne, %1, %c0_i32_0 : i32
    scf.if %2 {
      %c0_10 = arith.constant 0 : index
      %c0_11 = arith.constant 0 : index
      %12 = vector.load %arg5[%c0_10, %c0_11] : memref<1x128xf32, #tpu.memory_space<vmem>>, vector<1x128xf32>
      %13 = vector.shape_cast %12 : vector<1x128xf32> to vector<1x128xf32>
      %14 = vector.broadcast %13 : vector<1x128xf32> to vector<64x128xf32>
      %c0_12 = arith.constant 0 : index
      %c0_13 = arith.constant 0 : index
      %15 = vector.load %arg7[%c0_12, %c0_13] : memref<64x128xf32, #tpu.memory_space<vmem>>, vector<64x128xf32>
      tpu.vector_store %arg7[%c0_12, %c0_13], %14 {strides = array<i32>} : memref<64x128xf32, #tpu.memory_space<vmem>>, vector<64x128xf32>,
    } else {
    }
    %c0 = arith.constant 0 : index
    %c0_1 = arith.constant 0 : index
    %3 = vector.load %arg7[%c0, %c0_1] : memref<64x128xf32, #tpu.memory_space<vmem>>, vector<64x128xf32>
    %c0_2 = arith.constant 0 : index
    %c0_3 = arith.constant 0 : index
    %4 = vector.load %arg3[%c0_2, %c0_3] : memref<64x128xbf16, #tpu.memory_space<vmem>>, vector<64x128xbf16>
    %c0_4 = arith.constant 0 : index
    %c0_5 = arith.constant 0 : index
    %5 = vector.load %arg4[%c0_4, %c0_5] : memref<128x128xbf16, #tpu.memory_space<vmem>>, vector<128x128xbf16>
    %cst = arith.constant dense<0.000000e+00> : vector<64x128xf32>
    %6 = tpu.matmul %4, %5, %cst {dimension_numbers = #tpu.dot_dimension_numbers<[1], [0], [0], [1], [0, 0, 1, 1], [], []>} : vector<64x128xbf16>, vector<128x128xbf16>, vector<64x128xf32> -> vector<64x128xf32>
    %7 = arith.addf %3, %6 : vector<64x128xf32>
    %c0_6 = arith.constant 0 : index
    %c0_7 = arith.constant 0 : index
    %8 = vector.load %arg7[%c0_6, %c0_7] : memref<64x128xf32, #tpu.memory_space<vmem>>, vector<64x128xf32>
    tpu.vector_store %arg7[%c0_6, %c0_7], %7 {strides = array<i32>} : memref<64x128xf32, #tpu.memory_space<vmem>>, vector<64x128xf32>,
    %c0_i32_8 = arith.constant 0 : i32
    %9 = arith.cmpi eq, %arg2, %c0_i32_8 : i32
    %10 = arith.extui %9 : i1 to i32
    %c0_i32_9 = arith.constant 0 : i32
    %11 = arith.cmpi ne, %10, %c0_i32_9 : i32
    scf.if %11 {
      %c0_10 = arith.constant 0 : index
      %c0_11 = arith.constant 0 : index
      %12 = vector.load %arg7[%c0_10, %c0_11] : memref<64x128xf32, #tpu.memory_space<vmem>>, vector<64x128xf32>
      %cst_12 = arith.constant 0.000000e+00 : f32
      %13 = vector.broadcast %cst_12 : f32 to vector<64x128xf32>
      %14 = arith.maximumf %12, %13 : vector<64x128xf32>
      %15 = arith.truncf %14 : vector<64x128xf32> to vector<64x128xbf16>
      %c0_13 = arith.constant 0 : index
      %c0_14 = arith.constant 0 : index
      %16 = vector.load %arg6[%c0_13, %c0_14] : memref<64x128xbf16, #tpu.memory_space<vmem>>, vector<64x128xbf16>
      tpu.vector_store %arg6[%c0_13, %c0_14], %15 {strides = array<i32>} : memref<64x128xbf16, #tpu.memory_space<vmem>>, vector<64x128xbf16>,
    } else {
    }
    return
  }
  func.func @transform_0(%arg0: i32, %arg1: i32, %arg2: i32) -> (i32, i32) {
    %c0_i32 = arith.constant 0 : i32
    return %arg0, %arg2 : i32, i32
  }
  func.func @transform_1(%arg0: i32, %arg1: i32, %arg2: i32) -> (i32, i32) {
    %c0_i32 = arith.constant 0 : i32
    return %arg2, %arg1 : i32, i32
  }
  func.func @transform_2(%arg0: i32, %arg1: i32, %arg2: i32) -> (i32, i32) {
    %c0_i32 = arith.constant 0 : i32
    %c0_i32_0 = arith.constant 0 : i32
    return %c0_i32, %arg1 : i32, i32
  }
  func.func @transform_3(%arg0: i32, %arg1: i32, %arg2: i32) -> (i32, i32) {
    %c0_i32 = arith.constant 0 : i32
    return %arg0, %arg1 : i32, i32
  }
}

</mosaic_0001>

<bundles_post_ra>
// kernel: tpu_custom_call.1
= control target key start
LH: loop header
LB: loop body
LE: loop exit
PB: predicated region body
PF: predicated region fallthrough
CT: control target
= control target key end

     0   :  { %8 = vsyncpa [#allocation4], 0  ;;  %s1273_s0 = inlined_call_operand.hbm [shape: bf16[128,128], index: 0, kind: input, shape index: {}]   ;;  %s1274_s1 = inlined_call_operand.hbm [shape: bf16[128,128], index: 1, kind: input, shape index: {}]   ;;  %s1275_s2 = inlined_call_operand.vmem [shape: f32[1,128], index: 2, kind: input, shape index: {}]   ;;  %s1276_s3 = inlined_call_operand.hbm [shape: bf16[128,128], index: 3, kind: output, shape index: {}]  }
   0x1   :  { %10 = vsyncpa [#allocation4 + $0x1], 0 }
   0x2   :  { %11 = vsyncpa [#allocation7], 0 }
   0x3   :  { %12 = vsyncpa [#allocation5], 0 }
   0x4   :  { %14 = vsyncpa [#allocation5 + $0x1], 0  ;;  %s1035_s12 = smov 0   ;;  %s1037_s13 = smov 0  }
   0x5   :  { %s1039_s14 = smov 0   ;;  %s1041_s15 = smov 0  }
   0x6   :  { %s1043_s16 = smov 0   ;;  %s1045_s17 = smov 0  }
   0x7 LB: > { %s649_s18 = sadd.s32 4294967295, %s1006_s17   ;;  %s650_s19 = sadd.s32 4294967294, %s1006_s17   ;;  %s1006_s17 = sphi %s1045_s17, %s20_s17   ;;  %s1002_s16 = sphi %s1043_s16, %s1300_s16   ;;  %s998_s15 = sphi %s1041_s15, %s1299_s15   ;;  %s994_s14 = sphi %s1039_s14, %s1298_s14   ;;  %s990_s13 = sphi %s1037_s13, %s1297_s13   ;;  %s986_s12 = sphi %s1035_s12, %s1296_s12  }
   0x8   : > { %p61_p0 = scmp.ne.s32.totalorder %s990_s13, %s986_s12  ;;  %p1069_p1 = scmp.eq.s32.totalorder %s649_s18, 0 }
   0x9   : > { %p1073_p2 = scmp.eq.s32.totalorder %s649_s18, 1  ;;  %p147_p3 = scmp.eq.s32.totalorder %s650_s19, 1 }
   0xa   : > { %s1281_s20 = scalar_select %p1069_p1, 1, 0 }
   0xb   : > { %s1282_s21 = scalar_select %p1073_p2, 1, 0 }
   0xc   : > { %p1079_p4 = por %p1069_p1, %p61_p0  ;;  %p651_p5 = scmp.ge.s32.totalorder %s1006_s17, 1 }
   0xd   : > { %p1084_p6 = por %p147_p3, %p61_p0  ;;  %p154_p7 = scmp.lt.s32.totalorder %s1006_s17, 3 }
   0xe   : > { %s1283_s22 = scalar_select %p1079_p4, 1, 0 }
   0xf   : > { %s1284_s23 = scalar_select %p1084_p6, 1, 0 }
  0x10   : > { %p1089_p8 = pnand %p651_p5, %p154_p7  ;;  %s1008_s25 = smov [#allocation6]  }
  0x11   : > { %s170_s26 = sshll.u32 %s1008_s25, 4  ;;  %s39_s28 = sadd.s32 1, %s1002_s16  ;;  %s171_s26 = int_to_ptr.vmem [resolvable:$true] %s170_s26 }
  0x12   : > { %s1285_s24 = scalar_select %p1089_p8, 1, 0 }
  0x13   : > { %p781_p9 = pneg %p1089_p8  ;;  %s862_s4 = scalar_lea.hbm %s1274_s1, 1024 }
  0x14   : > { %p863_p12 = scmp.ne.s32.totalorder %s1274_s1, %s862_s4  ;;  %p869_p5 = scmp.lt.u32.totalorder %s862_s4, %s1274_s1 }
  0x15   : > { %p1098_p11 = pnand %p781_p9, %p1069_p1 }
  0x17   : > { %p864_p13 = pneg %p1098_p11 }
  0x19   : > { %p865_p0 = pnand %p864_p13, %p863_p12 }
  0x1b   : > { %p866_p3 = pneg %p865_p0 }
  0x1d   : > { %p871_p7 = pnand %p869_p5, %p866_p3 }
  0x1f   : > { %874 = shalt.err (!%p871_p7)
}
  0x20   : > { %s875_s9 = scalar_lea.vmem %s171_s26, 1024  ;;  %p883_p1 = scmp.lt.s32.totalorder %s171_s26, %s171_s26 }
  0x21   : > { %p876_p9 = scmp.ne.s32.totalorder %s171_s26, %s875_s9  ;;  %p884_p4 = scmp.lt.s32.totalorder %s875_s9, %s875_s9 }
  0x23   : > { %p878_p10 = pnand %p876_p9, %p864_p13  ;;  %p885_p8 = por %p884_p4, %p883_p1 }
  0x25   : > { %p879_p6 = pneg %p878_p10 }
  0x27   : > { %p886_p2 = pnand %p885_p8, %p879_p6 }
  0x29   : > { %889 = shalt.err (!%p886_p2)
}
  0x2a   : > { %s1009_s10 = smov 64   ;;  %s1010_s11 = smov 4  }
  0x2b   : > { %784 = dma.hbm_to_vmem [thread:$0]  (!%p1098_p11), %s1274_s1, 1024, %s171_s26, [#allocation7], %s1009_s10, %s1009_s10, %s1010_s11  }
  0x2c   : > { %p41_p1 = scmp.ge.s32.totalorder %s39_s28, 2  ;;  %s48_s25 = sadd.s32 1, %s994_s14 }
  0x2d   : > { %p55_p2 = scmp.ne.s32.totalorder %s994_s14, %s990_s13  ;;  %p56_p4 = scmp.eq.s32.totalorder %s1006_s17, 0 }
  0x2e   : > { %s1302_s28 = smov (%p41_p1, %s39_s28), 0  ;;  %p1288_p8 = scmp.ne.s32.totalorder %s1282_s21, 0 }
  0x2f   : > { %p1128_p6 = por %p56_p4, %p55_p2  ;;  %s43_s30 = ssub.s32 %s1002_s16, %s1302_s28 }
  0x30   : > { %p1134_p10 = por %p1288_p8, %p55_p2  ;;  %p794_p12 = scmp.lt.s32.totalorder %s1006_s17, 2 }
  0x31   : > { %p46_p11 = scmp.eq.s32.totalorder %s43_s30, 0  ;;  %s190_s26 = sand.u32 1, %s994_s14  }
  0x32   : > { %s655_s4 = sshll.u32 %s190_s26, 5  ;;  %s688_s6 = sshll.u32 %s1002_s16, 9 }
  0x33   : > { %s1143_s5 = scalar_select %p46_p11, %s994_s14, %s48_s25  }
  0x34   : > { %s1149_s9 = scalar_lea.hbm %s1273_s0, %s688_s6  ;;  %s194_s21 = scalar_lea.vmem [#allocation3], %s655_s4 }
  0x35   : > { %s202_s18 = sshll.u32 %s194_s21, 4  ;;  %p1155_p13 = pnand %p794_p12, %p1128_p6  ;;  %s1151_s18 = int_to_ptr.vmem [resolvable:$true] %s202_s18 }
  0x36   : > { %s1159_s25 = scalar_lea.sflag [#allocation4], %s190_s26  ;;  %s890_s30 = scalar_lea.hbm %s1149_s9, 512 }
  0x37   : > { %p891_p0 = scmp.ne.s32.totalorder %s1149_s9, %s890_s30  ;;  %p892_p3 = pneg %p1155_p13 }
  0x38   : > { %s895_s29 = scalar_lea.hbm %s1273_s0, 1024  ;;  %p896_p9 = scmp.lt.u32.totalorder %s1149_s9, %s1273_s0 }
  0x39   : > { %p893_p5 = pnand %p892_p3, %p891_p0  ;;  %p897_p1 = scmp.lt.u32.totalorder %s895_s29, %s890_s30 }
  0x3a   : > { %p899_p4 = scmp.lt.u32.totalorder %s890_s30, %s1149_s9 }
  0x3b   : > { %p894_p7 = pneg %p893_p5  ;;  %p898_p2 = por %p897_p1, %p896_p9 }
  0x3d   : > { %p900_p6 = por %p899_p4, %p898_p2 }
  0x3f   : > { %p901_p8 = pnand %p900_p6, %p894_p7 }
  0x41   : > { %904 = shalt.err (!%p901_p8)
}
  0x42   : > { %s905_s26 = scalar_lea.vmem %s1151_s18, 512  ;;  %s1011_s21 = smov [#allocation3]  }
  0x43   : > { %p906_p12 = scmp.ne.s32.totalorder %s1151_s18, %s905_s26  ;;  %s910_s4 = sshll.u32 %s1011_s21, 4  ;;  %s911_s4 = int_to_ptr.vmem [resolvable:$false] %s910_s4 }
  0x44   : > { %s912_s6 = scalar_lea.vmem %s911_s4, 1024  ;;  %p913_p5 = scmp.lt.s32.totalorder %s1151_s18, %s911_s4 }
  0x45   : > { %p908_p11 = pnand %p906_p12, %p892_p3  ;;  %p914_p9 = scmp.lt.s32.totalorder %s912_s6, %s905_s26 }
  0x47   : > { %p909_p0 = pneg %p908_p11  ;;  %p915_p1 = por %p914_p9, %p913_p5 }
  0x49   : > { %p916_p2 = pnand %p915_p1, %p909_p0 }
  0x4b   : > { %919 = shalt.err (!%p916_p2)
}
  0x4c   : > { %788 = dma.hbm_to_vmem [thread:$0]  (!%p1155_p13), %s1149_s9, 512, %s1151_s18, %s1159_s25, %s1009_s10, %s1009_s10, %s1010_s11  }
  0x4d   : > { %p1291_p3 = scmp.ne.s32.totalorder %s1285_s24, 0 }
  0x4e   : > { %s1193_s30 = sand.u32 (!%p1291_p3), 1, %s990_s13   ;;  %p1292_p7 = scmp.ne.s32.totalorder (!%p1291_p3), %s1283_s22, 0 }
  0x4f   : > { %214 = sbr.rel (%p1291_p3) target bundleno = 359 (0x167), region = 32  ;;  %s659_s29 = sshll.u32 (!%p1291_p3), %s1193_s30, 5 }
  0x50   : > { %s217_s7 = scalar_lea.sflag (!%p1291_p3), [#allocation4], %s1193_s30  ;;  %s1199_s19 = scalar_lea.vmem (!%p1291_p3), [#allocation3], %s659_s29 }
  0x56   : > { %973 = dma.done.wait (%p1292_p7), %s217_s7, 512  }
  0x57   : > { %975 = vsyncadd (%p1292_p7), %s217_s7, 4294966784  ;;  %p1293_p13 = scmp.ne.s32.totalorder %s1281_s20, 0 }
  0x59   : > { %977 = dma.done.wait (%p1293_p13), [#allocation7], 1024  }
  0x5a   : > { %979 = vsyncadd (%p1293_p13), [#allocation7], 4294966272  ;;  %v850_v0 = vld [vmem:[#allocation6] sm:$0xff]   ;;  %v851_v1 = vld [vmem:[#allocation6 + $0x8] sm:$0xff]   ;;  %s249_s24 = scalar_lea.vmem [#allocation8], %s659_s29  ;;  %s697_s11 = sshll.u32 %s998_s15, 9 }
  0x5b   : > { %733 = vmatprep.subr.bf16.mxu0 %v850_v0  ;;  %757 = vmatprep.subr.bf16.mxu1 %v850_v0  ;;  %v852_v2 = vld [vmem:[#allocation6 + $0x10] sm:$0xff]   ;;  %v853_v3 = vld [vmem:[#allocation6 + $0x18] sm:$0xff]   ;;  %v858_v4 = vld [vmem:[%s1199_s19] sm:$0xff]   ;;  %s535_s10 = sshll.u32 %s249_s24, 4  ;;  %s1224_s15 = scalar_lea.hbm %s1276_s3, %s697_s11  ;;  %s1219_s10 = int_to_ptr.vmem [resolvable:$true] %s535_s10 }
  0x5c   : > { %734 = vmatpush3.bf16.msra.mxu0 %v850_v0  ;;  %765 = vmatpush3.bf16.msra.mxu1 %v850_v0  ;;  %v859_v5 = vld [vmem:[%s1199_s19 + $0x10] sm:$0xff]   ;;  %v854_v6 = vld [vmem:[#allocation6 + $0x20] sm:$0xff]   ;;  %v855_v7 = vld [vmem:[#allocation6 + $0x28] sm:$0xff]   ;;  %s521_s25 = scalar_lea.sflag [#allocation5], %s1193_s30  ;;  %s920_s8 = scalar_lea.vmem %s1219_s10, 512 }
  0x5d   : > { %735 = vmatprep.subr.bf16.mxu0 %v851_v1  ;;  %758 = vmatprep.subr.bf16.mxu1 %v851_v1  ;;  %v856_v8 = vld [vmem:[#allocation6 + $0x30] sm:$0xff]   ;;  %v857_v9 = vld [vmem:[#allocation6 + $0x38] sm:$0xff]   ;;  %v860_v10 = vld [vmem:[%s1199_s19 + $0x8] sm:$0xff]   ;;  %p921_p4 = scmp.ne.s32.totalorder %s1219_s10, %s920_s8  ;;  %s1012_s26 = smov [#allocation8]  }
  0x5e   : > { %749 = vmatprep.mubr.bf16.mxu0 %v858_v4  ;;  %753 = vmatprep.mubr.bf16.mxu1 %v859_v5  ;;  %v861_v11 = vld [vmem:[%s1199_s19 + $0x18] sm:$0xff]   ;;  %v662_v12 = vld [vmem:[%s1275_s2] ss:$0 sm:$0xff]  ;;  %s924_s21 = sshll.u32 %s1012_s26, 4  ;;  %s925_s21 = int_to_ptr.vmem [resolvable:$false] %s924_s21 }
  0x5f   : > { %p922_p6 = pnand %p921_p4, %p1134_p10  ;;  %s926_s4 = scalar_lea.vmem %s925_s21, 1024 }
  0x60   : > { %736 = vmatpush3.bf16.msra.mxu0 %v851_v1  ;;  %766 = vmatpush3.bf16.msra.mxu1 %v851_v1  ;;  %p927_p12 = scmp.lt.s32.totalorder %s1219_s10, %s925_s21  ;;  %p928_p11 = scmp.lt.s32.totalorder %s926_s4, %s920_s8 }
  0x61   : > { %737 = vmatprep.subr.bf16.mxu0 %v852_v2  ;;  %759 = vmatprep.subr.bf16.mxu1 %v852_v2  ;;  %p923_p8 = pneg %p922_p6 }
  0x62   : > { %p929_p0 = por %p928_p11, %p927_p12 }
  0x64   : > { %738 = vmatpush3.bf16.msra.mxu0 %v852_v2  ;;  %767 = vmatpush3.bf16.msra.mxu1 %v852_v2  ;;  %p930_p5 = pnand %p929_p0, %p923_p8 }
  0x65   : > { %739 = vmatprep.subr.bf16.mxu0 %v853_v3  ;;  %760 = vmatprep.subr.bf16.mxu1 %v853_v3 }
  0x68   : > { %740 = vmatpush3.bf16.msra.mxu0 %v853_v3  ;;  %768 = vmatpush3.bf16.msra.mxu1 %v853_v3 }
  0x69   : > { %741 = vmatprep.subr.bf16.mxu0 %v854_v6  ;;  %761 = vmatprep.subr.bf16.mxu1 %v854_v6 }
  0x6c   : > { %742 = vmatpush3.bf16.msra.mxu0 %v854_v6  ;;  %769 = vmatpush3.bf16.msra.mxu1 %v854_v6 }
  0x6d   : > { %743 = vmatprep.subr.bf16.mxu0 %v855_v7  ;;  %762 = vmatprep.subr.bf16.mxu1 %v855_v7 }
  0x70   : > { %744 = vmatpush3.bf16.msra.mxu0 %v855_v7  ;;  %770 = vmatpush3.bf16.msra.mxu1 %v855_v7 }
  0x71   : > { %745 = vmatprep.subr.bf16.mxu0 %v856_v8  ;;  %763 = vmatprep.subr.bf16.mxu1 %v856_v8 }
  0x74   : > { %746 = vmatpush3.bf16.msra.mxu0 %v856_v8  ;;  %771 = vmatpush3.bf16.msra.mxu1 %v856_v8 }
  0x75   : > { %747 = vmatprep.subr.bf16.mxu0 %v857_v9  ;;  %764 = vmatprep.subr.bf16.mxu1 %v857_v9 }
  0x78   : > { %748 = vmatpush3.bf16.msra.mxu0 %v857_v9  ;;  %772 = vmatpush3.bf16.msra.mxu1 %v857_v9 }
  0x7b   : > { %750 = vmatmul.mubr.bf16.vlgmr.msra.gmra.mrb[0].mxu0 %v860_v10  ;;  %754 = vmatmul.mubr.bf16.vlgmr.msra.gmra.mrb[0].mxu1 %v861_v11 }
 0x14e   : > { %v751_v13 = vpop.f32.mrb[0].mxu0  ;;  %v755_v14 = vpop.f32.mrb[0].mxu1 }
 0x14f   : > { %v447_v15 = vadd.f32 %v751_v13, %v662_v12  ;;  %v451_v16 = vadd.f32 %v755_v14, %v662_v12  ;;  %v414_v17 = vpop.f32.mrb[1].mxu0  ;;  %v430_v18 = vpop.f32.mrb[1].mxu1 }
 0x150   : > { %v445_v19 = vadd.f32 %v662_v12, %v414_v17  ;;  %v449_v20 = vadd.f32 %v662_v12, %v430_v18  ;;  %v752_v21 = vpop.f32.mrb[2].mxu0  ;;  %v756_v22 = vpop.f32.mrb[2].mxu1 }
 0x151   : > { %v448_v23 = vadd.f32 %v752_v21, %v662_v12  ;;  %v452_v24 = vadd.f32 %v756_v22, %v662_v12  ;;  %v417_v25 = vpop.f32.mrb[3].mxu0  ;;  %v433_v26 = vpop.f32.mrb[3].mxu1  ;;  %v474_v29 = vmax.f32 %v447_v15, 0.0  ;;  %v478_v30 = vmax.f32 %v451_v16, 0.0 }
 0x152   : > { %v446_v27 = vadd.f32 %v662_v12, %v417_v25  ;;  %v450_v28 = vadd.f32 %v662_v12, %v433_v26  ;;  %v472_v33 = vmax.f32 %v445_v19, 0.0  ;;  %v476_v34 = vmax.f32 %v449_v20, 0.0 }
 0x153   : > { %v475_v31 = vmax.f32 %v448_v23, 0.0  ;;  %v479_v32 = vmax.f32 %v452_v24, 0.0 }
 0x154   : > { %v473_v35 = vmax.f32 %v446_v27, 0.0  ;;  %v477_v36 = vmax.f32 %v450_v28, 0.0 }
 0x155   : > { %v706_v37 = vpack.c.bf16 %v475_v31, %v474_v29  ;;  %v716_v38 = vpack.c.bf16 %v479_v32, %v478_v30 }
 0x156   : > { %v701_v39 = vpack.c.bf16 %v473_v35, %v472_v33  ;;  %v711_v40 = vpack.c.bf16 %v477_v36, %v476_v34 }
 0x157   : > { %718 = vst [vmem:[%s249_s24 + $0x8] sm:$0xff] %v706_v37   ;;  %720 = vst [vmem:[%s249_s24 + $0x18] sm:$0xff] %v716_v38  }
 0x158   : > { %702 = vst [vmem:[%s249_s24] sm:$0xff] %v701_v39   ;;  %719 = vst [vmem:[%s249_s24 + $0x10] sm:$0xff] %v711_v40  }
 0x159   : > { %933 = shalt.err (!%p930_p5)
}
 0x15a   : > { %s934_s6 = scalar_lea.hbm %s1224_s15, 512  ;;  %s938_s19 = scalar_lea.hbm %s1276_s3, 1024 }
 0x15b   : > { %p935_p9 = scmp.ne.s32.totalorder %s1224_s15, %s934_s6  ;;  %p939_p3 = scmp.lt.u32.totalorder %s1224_s15, %s1276_s3 }
 0x15c   : > { %p940_p7 = scmp.lt.u32.totalorder %s938_s19, %s934_s6  ;;  %p942_p4 = scmp.lt.u32.totalorder %s934_s6, %s1224_s15 }
 0x15d   : > { %p936_p1 = pnand %p935_p9, %p1134_p10 }
 0x15e   : > { %p941_p13 = por %p940_p7, %p939_p3 }
 0x15f   : > { %p937_p2 = pneg %p936_p1 }
 0x160   : > { %p943_p6 = por %p942_p4, %p941_p13 }
 0x162   : > { %p944_p8 = pnand %p943_p6, %p937_p2 }
 0x164   : > { %947 = shalt.err (!%p944_p8)
}
 0x165   : > { %s1013_s24 = smov 64   ;;  %s1014_s11 = smov 4  }
 0x166   : > { %779 = dma.vmem_to_hbm [thread:$0]  (%p1134_p10), %s1219_s10, 512, %s1224_s15, %s521_s25, %s1013_s24, %s1013_s24, %s1014_s11  }
 0x167 PF: > { %s550_s9 = sand.u32 1, %s986_s12   ;;  %p1294_p12 = scmp.ne.s32.totalorder %s1284_s23, 0 }
 0x168   : > { %p1295_p11 = scmp.ge.s32.totalorder %s1006_s17, 2  ;;  %s551_s18 = scalar_lea.sflag [#allocation5], %s550_s9 }
 0x16a   : > { %p790_p0 = pnand %p1295_p11, %p1294_p12 }
 0x16c   : > { %981 = dma.done.wait (!%p790_p0), %s551_s18, 512  }
 0x16d   : > { %983 = vsyncadd (!%p790_p0), %s551_s18, 4294966784  ;;  %s20_s17 = sadd.s32 1, %s1006_s17   ;;  %s1296_s12 = smov %s990_s13 }
 0x16e   : > { %p17_p5 = scmp.ge.s32.totalorder %s20_s17, 4   ;;  %s1297_s13 = smov %s994_s14 }
 0x16f   : > { %s1298_s14 = smov %s1143_s5  ;;  %s1299_s15 = smov %s1002_s16 }
 0x170   : > { %s1300_s16 = smov %s1302_s28  ;;  %19 = sbr.rel (!%p17_p5) target bundleno = 7 (0x7), region = 93 }
 0x177   :  { %556 = vsyncpa [#allocation4], 1 }
 0x178   :  { %558 = vsyncpa [#allocation4 + $0x1], 1 }
 0x179   :  { %559 = vsyncpa [#allocation7], 1 }
 0x17a   :  { %560 = vsyncpa [#allocation5], 1 }
 0x17b   :  { %562 = vsyncpa [#allocation5 + $0x1], 1 }

</bundles_post_ra>
